<compile_context>
chip_gen: v7x
topology: tpu7x:2x2x1
jax: 0.10.0
libtpu: 0.0.40
codegen_flags: <defaults>
</compile_context>

<pallas_src>
import math

import jax
import jax.numpy as jnp
from jax.experimental import pallas as pl
from jax.experimental.pallas import tpu as pltpu


def _make_packed_kernel(k: int, L: int):
    """Kernel over packed rows: input block (blk, k*L), output block (blk, k)."""

    def kernel(x_ref, o_ref):
        x = x_ref[...].astype(jnp.float32)              # (blk, k*L), lane-dense
        plogp = x * jnp.log(x)                          # NaN where x <= 0
        plogp = jnp.where(jnp.isnan(plogp), jnp.zeros_like(plogp), plogp)
        # Lanes [j*L, (j+1)*L) of a packed row belong to original row j.
        parts = [
            jnp.sum(plogp[:, j * L:(j + 1) * L], axis=-1, keepdims=True)
            for j in range(k)
        ]
        out = parts[0] if k == 1 else jnp.concatenate(parts, axis=-1)
        o_ref[...] = (-out).astype(o_ref.dtype)

    return kernel


def _rows_kernel(x_ref, o_ref):
    """Generic fallback: input block (blk_r, L), output block (blk_r, 1)."""
    x = x_ref[...].astype(jnp.float32)
    plogp = x * jnp.log(x)
    plogp = jnp.where(jnp.isnan(plogp), jnp.zeros_like(plogp), plogp)
    o_ref[...] = (-jnp.sum(plogp, axis=-1, keepdims=True)).astype(o_ref.dtype)


def entropy(x):
    """Pallas equivalent of Entropy.forward: -sum(x*log(x), axis=-1), NaN->0."""
    orig_shape = x.shape
    L = int(orig_shape[-1])
    R = int(math.prod(orig_shape[:-1]))  # == 1 for 1-D inputs
    out_dtype = x.dtype if jnp.issubdtype(x.dtype, jnp.floating) else jnp.float32
    itemsize = jnp.dtype(x.dtype).itemsize
    out_itemsize = jnp.dtype(out_dtype).itemsize

    x2 = x.reshape(R, L)  # keep native dtype; cast to f32 inside the kernel

    # ~2 MiB input blocks: 2x double-buffering stays well under v5e's 16 MiB
    # scoped-VMEM default and v7x's 64 MiB physical VMEM.
    target_block_bytes = 2 * 1024 * 1024

    cost = pl.CostEstimate(
        flops=3 * R * L,
        transcendentals=R * L,
        bytes_accessed=R * L * itemsize + R * out_itemsize,
    )
    compiler_params = pltpu.CompilerParams(dimension_semantics=("parallel",))

    # Packed path: fold k = 128 // L rows into one 128-lane packed row.
    can_pack = (L <= 128) and (128 % L == 0) and (R % (128 // L) == 0)
    if can_pack:
        k = 128 // L
        Rp = R // k
        xp = x2.reshape(Rp, 128)

        blk = max(8, (target_block_bytes // (128 * itemsize)) // 8 * 8)
        blk = min(blk, Rp)
        if blk == Rp and Rp >= 16 and Rp % 16 == 0:
            blk = Rp // 2  # keep >= 2 grid steps (v7x megacore / pipelining)

        out2 = pl.pallas_call(
            _make_packed_kernel(k, L),
            out_shape=jax.ShapeDtypeStruct((Rp, k), out_dtype),
            grid_spec=pltpu.PrefetchScalarGridSpec(
                num_scalar_prefetch=0,
                grid=(pl.cdiv(Rp, blk),),
                in_specs=[pl.BlockSpec((blk, 128), lambda i: (i, 0))],
                out_specs=pl.BlockSpec((blk, k), lambda i: (i, 0)),
            ),
            compiler_params=compiler_params,
            cost_estimate=cost,
        )(xp)
        # (Rp, k) in row-major order is exactly the original row order.
        return out2.reshape(orig_shape[:-1])

    # Generic fallback: each block spans the full reduction axis.
    # TODO(synk): for very large L (single block exceeding VMEM) the reduction
    # axis itself would need tiling with an accumulator; not needed here.
    blk_r = max(8, (target_block_bytes // max(1, L * itemsize)) // 8 * 8)
    blk_r = min(blk_r, R)
    if blk_r == R and R >= 16 and R % 16 == 0:
        blk_r = R // 2

    out2 = pl.pallas_call(
        _rows_kernel,
        out_shape=jax.ShapeDtypeStruct((R, 1), out_dtype),
        grid_spec=pltpu.PrefetchScalarGridSpec(
            num_scalar_prefetch=0,
            grid=(pl.cdiv(R, blk_r),),
            in_specs=[pl.BlockSpec((blk_r, L), lambda i: (i, 0))],
            out_specs=pl.BlockSpec((blk_r, 1), lambda i: (i, 0)),
        ),
        compiler_params=compiler_params,
        cost_estimate=cost,
    )(x2)
    return out2.reshape(orig_shape[:-1])


def _reference(x):
    plogp = x * jnp.log(x)
    plogp = jnp.where(jnp.isnan(plogp), 0.0, plogp)
    return -jnp.sum(plogp, axis=-1)


if __name__ == "__main__":
    key = jax.random.PRNGKey(0)
    B, C, H, W = 2, 4, 16, 16
    # Probability-like positive inputs with some exact zeros to exercise the
    # NaN (0 * log 0) path the PyTorch module handles.
    x = jax.random.uniform(key, (B, C, H, W), dtype=jnp.float32)
    mask = jax.random.uniform(jax.random.PRNGKey(1), (B, C, H, W)) < 0.1
    x = jnp.where(mask, 0.0, x)
    x = x / jnp.maximum(jnp.sum(x, axis=-1, keepdims=True), 1e-12)

    out = entropy(x)
    jax.block_until_ready(out)

    ref = _reference(x)
    assert out.shape == (B, C, H), out.shape
    assert jnp.allclose(out, ref, atol=1e-5, rtol=1e-5), (out, ref)
    print("KERNEL_OK")
</pallas_src>

<mosaic_0001>
module attributes {stable_mosaic.version = 11 : i64} {
  func.func @kernel(%arg0: i32, %arg1: memref<8x128xf32, #tpu.memory_space<vmem>>, %arg2: memref<8x8xf32, #tpu.memory_space<vmem>>) attributes {dimension_semantics = [#tpu.dimension_semantics<parallel>], iteration_bounds = array<i64: 2>, scalar_prefetch = 0 : i64, scratch_operands = 0 : i64, tpu.core_type = #tpu.core_type<tc>, window_params = [{transform_indices = @transform_0, window_bounds = array<i64: 8, 128>}, {transform_indices = @transform_1, window_bounds = array<i64: 8, 8>}]} {
    %c0 = arith.constant 0 : index
    %c0_0 = arith.constant 0 : index
    %0 = vector.load %arg1[%c0, %c0_0] : memref<8x128xf32, #tpu.memory_space<vmem>>, vector<8x128xf32>
    %1 = math.log %0 : vector<8x128xf32>
    %2 = arith.mulf %0, %1 : vector<8x128xf32>
    %3 = arith.cmpf one, %2, %2 : vector<8x128xf32>
    %cst = arith.constant 0.000000e+00 : f32
    %4 = vector.broadcast %cst : f32 to vector<8x128xf32>
    %5 = arith.select %3, %4, %2 : vector<8x128xi1>, vector<8x128xf32>
    %6 = vector.extract_strided_slice %5 {offsets = [0, 0], sizes = [8, 16], strides = [1, 1]} : vector<8x128xf32> to vector<8x16xf32>
    %cst_1 = arith.constant dense<0.000000e+00> : vector<8xf32>
    %7 = vector.multi_reduction <add>, %6, %cst_1 [1] : vector<8x16xf32> to vector<8xf32>
    %8 = vector.shape_cast %7 : vector<8xf32> to vector<8x1xf32>
    %9 = vector.extract_strided_slice %5 {offsets = [0, 16], sizes = [8, 16], strides = [1, 1]} : vector<8x128xf32> to vector<8x16xf32>
    %cst_2 = arith.constant dense<0.000000e+00> : vector<8xf32>
    %10 = vector.multi_reduction <add>, %9, %cst_2 [1] : vector<8x16xf32> to vector<8xf32>
    %11 = vector.shape_cast %10 : vector<8xf32> to vector<8x1xf32>
    %12 = vector.extract_strided_slice %5 {offsets = [0, 32], sizes = [8, 16], strides = [1, 1]} : vector<8x128xf32> to vector<8x16xf32>
    %cst_3 = arith.constant dense<0.000000e+00> : vector<8xf32>
    %13 = vector.multi_reduction <add>, %12, %cst_3 [1] : vector<8x16xf32> to vector<8xf32>
    %14 = vector.shape_cast %13 : vector<8xf32> to vector<8x1xf32>
    %15 = vector.extract_strided_slice %5 {offsets = [0, 48], sizes = [8, 16], strides = [1, 1]} : vector<8x128xf32> to vector<8x16xf32>
    %cst_4 = arith.constant dense<0.000000e+00> : vector<8xf32>
    %16 = vector.multi_reduction <add>, %15, %cst_4 [1] : vector<8x16xf32> to vector<8xf32>
    %17 = vector.shape_cast %16 : vector<8xf32> to vector<8x1xf32>
    %18 = vector.extract_strided_slice %5 {offsets = [0, 64], sizes = [8, 16], strides = [1, 1]} : vector<8x128xf32> to vector<8x16xf32>
    %cst_5 = arith.constant dense<0.000000e+00> : vector<8xf32>
    %19 = vector.multi_reduction <add>, %18, %cst_5 [1] : vector<8x16xf32> to vector<8xf32>
    %20 = vector.shape_cast %19 : vector<8xf32> to vector<8x1xf32>
    %21 = vector.extract_strided_slice %5 {offsets = [0, 80], sizes = [8, 16], strides = [1, 1]} : vector<8x128xf32> to vector<8x16xf32>
    %cst_6 = arith.constant dense<0.000000e+00> : vector<8xf32>
    %22 = vector.multi_reduction <add>, %21, %cst_6 [1] : vector<8x16xf32> to vector<8xf32>
    %23 = vector.shape_cast %22 : vector<8xf32> to vector<8x1xf32>
    %24 = vector.extract_strided_slice %5 {offsets = [0, 96], sizes = [8, 16], strides = [1, 1]} : vector<8x128xf32> to vector<8x16xf32>
    %cst_7 = arith.constant dense<0.000000e+00> : vector<8xf32>
    %25 = vector.multi_reduction <add>, %24, %cst_7 [1] : vector<8x16xf32> to vector<8xf32>
    %26 = vector.shape_cast %25 : vector<8xf32> to vector<8x1xf32>
    %27 = vector.extract_strided_slice %5 {offsets = [0, 112], sizes = [8, 16], strides = [1, 1]} : vector<8x128xf32> to vector<8x16xf32>
    %cst_8 = arith.constant dense<0.000000e+00> : vector<8xf32>
    %28 = vector.multi_reduction <add>, %27, %cst_8 [1] : vector<8x16xf32> to vector<8xf32>
    %29 = vector.shape_cast %28 : vector<8xf32> to vector<8x1xf32>
    %30 = tpu.concatenate %8, %11, %14, %17, %20, %23, %26, %29 in 1 : vector<8x1xf32>, vector<8x1xf32>, vector<8x1xf32>, vector<8x1xf32>, vector<8x1xf32>, vector<8x1xf32>, vector<8x1xf32>, vector<8x1xf32> -> vector<8x8xf32>
    %cst_9 = arith.constant 0.000000e+00 : f32
    %31 = vector.broadcast %cst_9 : f32 to vector<8x8xf32>
    %32 = arith.subf %31, %30 : vector<8x8xf32>
    %c0_10 = arith.constant 0 : index
    %c0_11 = arith.constant 0 : index
    %33 = vector.load %arg2[%c0_10, %c0_11] : memref<8x8xf32, #tpu.memory_space<vmem>>, vector<8x8xf32>
    tpu.vector_store %arg2[%c0_10, %c0_11], %32 {strides = array<i32>} : memref<8x8xf32, #tpu.memory_space<vmem>>, vector<8x8xf32>,
    return
  }
  func.func @transform_0(%arg0: i32) -> (i32, i32) {
    %c0_i32 = arith.constant 0 : i32
    %c0_i32_0 = arith.constant 0 : i32
    return %arg0, %c0_i32 : i32, i32
  }
  func.func @transform_1(%arg0: i32) -> (i32, i32) {
    %c0_i32 = arith.constant 0 : i32
    %c0_i32_0 = arith.constant 0 : i32
    return %arg0, %c0_i32 : i32, i32
  }
}

</mosaic_0001>

<bundles_post_ra>
// kernel: tpu_custom_call.1
= control target key start
LH: loop header
LB: loop body
LE: loop exit
PB: predicated region body
PF: predicated region fallthrough
CT: control target
= control target key end

     0   :  { %6 = vsyncpa [#allocation3], 0  ;;  %s524_s0 = inlined_call_operand.hbm [shape: f32[16,128], index: 0, kind: input, shape index: {}]   ;;  %s525_s1 = inlined_call_operand.vmem [shape: f32[16,8], index: 1, kind: output, shape index: {}]  }
   0x1   :  { %8 = vsyncpa [#allocation3 + $0x1], 0  ;;  %s409_s6 = smov 0   ;;  %s411_s7 = smov 0  }
   0x2   :  { %s413_s8 = smov 0   ;;  %s415_s9 = smov 0  }
   0x3 LB: > { %s428_s10 = sadd.s32 4294967295, %s389_s9   ;;  %s431_s11 = sadd.s32 1, %s389_s9   ;;  %s389_s9 = sphi %s415_s9, %s533_s9   ;;  %s385_s8 = sphi %s413_s8, %s532_s8   ;;  %s381_s7 = sphi %s411_s7, %s531_s7   ;;  %s377_s6 = sphi %s409_s6, %s530_s6  }
   0x4   : > { %s18_s12 = ssub.s32 %s389_s9, %s431_s11  ;;  %s21_s13 = sadd.s32 1, %s385_s8 }
   0x5   : > { %p19_p0 = scmp.eq.s32.totalorder %s18_s12, 0  ;;  %p28_p1 = scmp.ne.s32.totalorder %s385_s8, %s381_s7 }
   0x6   : > { %p29_p2 = scmp.eq.s32.totalorder %s389_s9, 0  ;;  %p34_p3 = scmp.ne.s32.totalorder %s381_s7, %s377_s6 }
   0x7   : > { %s441_s14 = scalar_select %p19_p0, %s385_s8, %s21_s13  }
   0x8   : > { %p30_p4 = por %p29_p2, %p28_p1  ;;  %p35_p5 = scmp.eq.s32.totalorder %s428_s10, 0 }
   0x9   : > { %p283_p6 = scmp.lt.s32.totalorder %s389_s9, 2  ;;  %s84_s16 = sand.u32 1, %s385_s8  }
   0xa   : > { %p445_p7 = por %p35_p5, %p34_p3  ;;  %s270_s17 = sshll.u32 %s84_s16, 3 }
   0xb   : > { %s271_s18 = sshll.u32 %s389_s9, 7  ;;  %s88_s22 = scalar_lea.vmem [#allocation2], %s270_s17 }
   0xc   : > { %s454_s21 = scalar_lea.hbm %s524_s0, %s271_s18  ;;  %s95_s23 = sshll.u32 %s88_s22, 4  ;;  %s456_s23 = int_to_ptr.vmem [resolvable:$true] %s95_s23 }
   0xd   : > { %p458_p8 = pnand %p283_p6, %p30_p4  ;;  %s85_s25 = scalar_lea.sflag [#allocation3], %s84_s16 }
   0xe   : > { %s325_s26 = scalar_lea.hbm %s454_s21, 128  ;;  %s330_s29 = scalar_lea.hbm %s524_s0, 256 }
   0xf   : > { %p326_p11 = scmp.ne.s32.totalorder %s454_s21, %s325_s26  ;;  %p327_p12 = pneg %p458_p8 }
  0x10   : > { %p331_p1 = scmp.lt.u32.totalorder %s454_s21, %s524_s0  ;;  %p332_p2 = scmp.lt.u32.totalorder %s330_s29, %s325_s26 }
  0x11   : > { %p328_p13 = pnand %p327_p12, %p326_p11  ;;  %p334_p4 = scmp.lt.u32.totalorder %s325_s26, %s454_s21 }
  0x12   : > { %p333_p3 = por %p332_p2, %p331_p1 }
  0x13   : > { %p329_p0 = pneg %p328_p13 }
  0x14   : > { %p335_p5 = por %p334_p4, %p333_p3 }
  0x16   : > { %p336_p6 = pnand %p335_p5, %p329_p0 }
  0x18   : > { %339 = shalt.err (!%p336_p6)
}
  0x19   : > { %s340_s3 = scalar_lea.vmem %s456_s23, 128  ;;  %s391_s4 = smov [#allocation2]  }
  0x1a   : > { %p341_p11 = scmp.ne.s32.totalorder %s456_s23, %s340_s3  ;;  %s345_s5 = sshll.u32 %s391_s4, 4  ;;  %s346_s5 = int_to_ptr.vmem [resolvable:$false] %s345_s5 }
  0x1b   : > { %s347_s6 = scalar_lea.vmem %s346_s5, 256  ;;  %p348_p10 = scmp.lt.s32.totalorder %s456_s23, %s346_s5 }
  0x1c   : > { %p343_p13 = pnand %p341_p11, %p327_p12  ;;  %p349_p1 = scmp.lt.s32.totalorder %s347_s6, %s340_s3 }
  0x1e   : > { %p344_p9 = pneg %p343_p13  ;;  %p350_p2 = por %p349_p1, %p348_p10 }
  0x20   : > { %p351_p3 = pnand %p350_p2, %p344_p9 }
  0x22   : > { %354 = shalt.err (!%p351_p3)
}
  0x23   : > { %282 = dma.hbm_to_vmem [thread:$0]  (!%p458_p8), %s454_s21, 128, %s456_s23, %s85_s25  }
  0x24   : > { %p528_p0 = scmp.lt.s32.totalorder %s389_s9, 3  ;;  %p529_p4 = scmp.ge.s32.totalorder %s389_s9, 1 }
  0x26   : > { %p101_p12 = pnand %p529_p4, %p528_p0 }
  0x27   : > { %s106_s12 = sand.u32 (!%p101_p12), 1, %s381_s7  }
  0x28   : > { %104 = sbr.rel (%p101_p12) target bundleno = 406 (0x196), region = 24  ;;  %s273_s13 = sshll.u32 (!%p101_p12), %s106_s12, 3 }
  0x29   : > { %s107_s16 = scalar_lea.sflag (!%p101_p12), [#allocation3], %s106_s12  ;;  %s110_s17 = scalar_lea.vmem (!%p101_p12), [#allocation2], %s273_s13 }
  0x2f   : > { %372 = dma.done.wait (%p445_p7), %s107_s16, 128  }
  0x30   : > { %374 = vsyncadd (%p445_p7), %s107_s16, 4294967168  ;;  %v132_v0 = vld [vmem:[%s110_s17] sm:$0xff]  ;;  %s392_s9 = smov 112   ;;  %s393_s18 = smov 96   ;;  %vm138_vm1 = vcmask 130048   ;;  %vm185_vm2 = vcmask 7168  }
  0x31   : > { %323 = vlog2.f32 %v132_v0  ;;  %s394_s19 = smov 80   ;;  %s395_s20 = smov 64   ;;  %vm187_vm3 = vcmask 15360   ;;  %vm189_vm4 = vcmask 23552   ;;  %vm191_vm5 = vcmask 31744  }
  0x32   : > { %s396_s15 = smov 48   ;;  %s397_s21 = smov 32   ;;  %vm193_vm6 = vcmask 39936   ;;  %vm195_vm7 = vcmask 48128   ;;  %vm197_vm8 = vcmask 56320   ;;  %vm200_vm9 = vcmask 64512  }
  0x33   : > { %s398_s22 = smov 16   ;;  %p128_p7 = scmp.lt.s32.totalorder %s428_s10, 1 }
  0x35   : > { %s535_s10 = smov (!%p128_p7, %s428_s10), 1 }
  0x36   : > { %s274_s23 = sshll.u32 %s535_s10, 3 }
  0x37   : > { %s131_s26 = scalar_lea.vmem %s525_s1, %s274_s23 }
  0x3b   : > { %v324_v1 = vpop.eup %323 }
  0x3c   : > { %v134_v2 = vmul.f32 0.6931472, %v324_v1 }
  0x3e   : > { %v135_v3 = vmul.f32 %v134_v2, %v132_v0 }
  0x40   : > { %vm136_vm0 = vcmp.ne.f32.partialorder %v135_v3, %v135_v3 }
  0x41   : > { %v137_v4 = vsel %vm136_vm0, 0.0, %v135_v3 }
  0x42   : > { %143 = vrot.lane.b32.xlu0 %v137_v4, %s392_s9  ;;  %149 = vrot.lane.b32.xlu1 %v137_v4, %s393_s18  ;;  %v139_v5 = vsel %vm138_vm1, %v137_v4, 0.0 }
  0x46   : > { %155 = vrot.lane.b32.xlu0 %v137_v4, %s394_s19 }
  0x65   : > { %140 = vadd.xlane.f32.xlu0 %v139_v5 }
  0x7b   : > { %161 = vrot.lane.b32.xlu0 %v137_v4, %s395_s20 }
  0x7f   : > { %167 = vrot.lane.b32.xlu0 %v137_v4, %s396_s15 }
  0x83   : > { %173 = vrot.lane.b32.xlu0 %v137_v4, %s397_s21 }
  0x87   : > { %179 = vrot.lane.b32.xlu0 %v137_v4, %s398_s22 }
  0xb4   : > { %v144_v6 = vpop.permute.xlu0 %143  ;;  %v150_v7 = vpop.permute.xlu1 %149 }
  0xb5   : > { %v146_v8 = vsel %vm138_vm1, %v144_v6, 0.0  ;;  %v152_v9 = vsel %vm138_vm1, %v150_v7, 0.0 }
  0xb6   : > { %147 = vadd.xlane.f32.xlu1 %v146_v8 }
  0xb8   : > { %v156_v10 = vpop.permute.xlu0 %155 }
  0xb9   : > { %v158_v11 = vsel %vm138_vm1, %v156_v10, 0.0 }
  0xba   : > { %153 = vadd.xlane.f32.xlu1 %v152_v9  ;;  %159 = vadd.xlane.f32.xlu0 %v158_v11 }
  0xf2   : > { %v141_v12 = vpop.xlane.xlu0 %140 }
  0xf6   : > { %v162_v13 = vpop.permute.xlu0 %161 }
  0xf7   : > { %v164_v14 = vsel %vm138_vm1, %v162_v13, 0.0 }
  0xf8   : > { %165 = vadd.xlane.f32.xlu1 %v164_v14 }
  0xfa   : > { %v168_v15 = vpop.permute.xlu0 %167 }
  0xfb   : > { %v170_v16 = vsel %vm138_vm1, %v168_v15, 0.0 }
  0xfc   : > { %171 = vadd.xlane.f32.xlu1 %v170_v16 }
  0xfe   : > { %v174_v17 = vpop.permute.xlu0 %173 }
  0xff   : > { %v176_v18 = vsel %vm138_vm1, %v174_v17, 0.0 }
 0x100   : > { %177 = vadd.xlane.f32.xlu1 %v176_v18 }
 0x102   : > { %v180_v19 = vpop.permute.xlu0 %179 }
 0x103   : > { %v182_v20 = vsel %vm138_vm1, %v180_v19, 0.0 }
 0x104   : > { %183 = vadd.xlane.f32.xlu1 %v182_v20 }
 0x143   : > { %v148_v21 = vpop.xlane.xlu1 %147 }
 0x144   : > { %v186_v25 = vsel %vm185_vm2, %v141_v12, %v148_v21 }
 0x147   : > { %v154_v22 = vpop.xlane.xlu1 %153  ;;  %v160_v27 = vpop.xlane.xlu0 %159 }
 0x148   : > { %v188_v26 = vsel %vm187_vm3, %v186_v25, %v154_v22 }
 0x149   : > { %v190_v29 = vsel %vm189_vm4, %v188_v26, %v160_v27 }
 0x185   : > { %v166_v23 = vpop.xlane.xlu1 %165 }
 0x186   : > { %v192_v30 = vsel %vm191_vm5, %v190_v29, %v166_v23 }
 0x189   : > { %v172_v24 = vpop.xlane.xlu1 %171 }
 0x18a   : > { %v194_v31 = vsel %vm193_vm6, %v192_v30, %v172_v24 }
 0x18d   : > { %v178_v28 = vpop.xlane.xlu1 %177 }
 0x18e   : > { %v196_v32 = vsel %vm195_vm7, %v194_v31, %v178_v28 }
 0x191   : > { %v184_v33 = vpop.xlane.xlu1 %183 }
 0x192   : > { %v198_v34 = vsel %vm197_vm8, %v196_v32, %v184_v33 }
 0x193   : > { %v199_v35 = vsub.f32 0.0, %v198_v34 }
 0x195   : > { %201 = vst.msk [vmem:[%s131_s26] sm:$0xff] %vm200_vm9, %v199_v35 }
 0x196 PF: > { %p11_p8 = scmp.ge.s32.totalorder %s431_s11, 4   ;;  %s530_s6 = smov %s381_s7 }
 0x197   : > { %s531_s7 = smov %s385_s8  ;;  %s532_s8 = smov %s441_s14 }
 0x198   : > { %s533_s9 = smov %s431_s11  ;;  %13 = sbr.rel (!%p11_p8) target bundleno = 3 (0x3), region = 64 }
 0x19f   :  { %221 = vsyncpa [#allocation3], 1 }
 0x1a0   :  { %223 = vsyncpa [#allocation3 + $0x1], 1 }

</bundles_post_ra>
